<compile_context>
chip_gen: v5e
topology: v5e:2x2
jax: 0.10.0
libtpu: 0.0.40
codegen_flags: <defaults>
</compile_context>

<pallas_src>
import jax
import jax.numpy as jnp
from jax import lax
from jax.experimental import pallas as pl
from jax.experimental.pallas import tpu as pltpu


def _round_up(a: int, b: int) -> int:
    return ((a + b - 1) // b) * b


def _pick_chunk(s8: int, max_chunk: int) -> int:
    """Largest divisor of s8 that is <= max_chunk."""
    if s8 <= max_chunk:
        return s8
    for c in range(max_chunk, 0, -1):
        if s8 % c == 0:
            return c
    return s8


def _choose_blocks(n: int, c_in: int, r: int, itemsize: int, tile: int):
    """Pick (Bn, S8): images per block and sublane-rows per block."""
    LANE = 128
    # ~2 MiB input slab per grid step: ~85-90% of HBM roofline, and double-buffered
    # in (4 MiB) + out (1.5 MiB) stays far inside v5e's 16 MiB scoped VMEM default
    # and v7x's 64 MiB physical VMEM.  (Block size is the biggest mem-bound lever.)
    TARGET = 2 * 1024 * 1024
    bytes_per_row = c_in * LANE * itemsize
    max_rows = max(tile, (TARGET // bytes_per_row) // 32 * 32)

    if r > max_rows:
        return 1, max_rows                      # large image: spatial tiles at the cap
    if n == 1:
        # Single image fits one block: split into exactly 2 big blocks so a v7x
        # megacore can put one on each TensorCore (skip the split for tiny inputs).
        if r >= 2 * tile:
            return 1, _round_up(-(-r // 2), tile)
        return 1, r
    # N >= 2: full-spatial blocks; group images per block up to the byte target but
    # keep >= 2 grid steps so the batch axis still shards across the two v7x TCs.
    per_image = r * bytes_per_row
    bn = max(1, min(n // 2, TARGET // per_image))
    while n % bn:
        bn -= 1
    return bn, r


def _make_kernel(chunk: int):
    def kernel(x_ref, w_ref, b_ref, o_ref):
        # x_ref: (Bn, C_in, S8, 128) VMEM    w_ref: (C_out, C_in) SMEM
        # b_ref: (C_out,) SMEM               o_ref: (Bn, C_out, S8, 128) VMEM
        c_out, c_in = w_ref.shape
        bn = x_ref.shape[0]
        s8 = x_ref.shape[2]
        n_chunks = s8 // chunk

        # Hoist all SMEM scalar reads out of the loop (JAX does not CSE them; the
        # loop-invariant sregs also let LLO hoist the scalar->vector splats).
        ws = [[w_ref[c, k] for k in range(c_in)] for c in range(c_out)]
        bs = [b_ref[c] for c in range(c_out)]

        def body(i, carry):
            base = pl.multiple_of(i * chunk, chunk)
            for nb in range(bn):                      # static unroll over images
                # Load each input-channel chunk once: lane-dense (chunk, 128) tiles.
                xs = [x_ref[nb, k, pl.ds(base, chunk), :].astype(jnp.float32)
                      for k in range(c_in)]
                for c in range(c_out):                # static unroll (C_out = 3)
                    # bias folded into the accumulator init
                    acc = xs[0] * ws[c][0] + bs[c]
                    for k in range(1, c_in):          # static unroll (C_in = 8)
                        acc = acc + xs[k] * ws[c][k]
                    # in-place ReLU in the PyTorch module -> returned tensor is relu'd
                    o_ref[nb, c, pl.ds(base, chunk), :] = (
                        jnp.maximum(acc, 0.0).astype(o_ref.dtype))
            return carry

        lax.fori_loop(0, n_chunks, body, 0)

    return kernel


def four2three_forward(x_nchw, weight, bias):
    """x_nchw: [N, C_in, H, W]; weight: [C_out, C_in] (1x1 conv kernel squeezed) or
    [C_out, C_in, 1, 1]; bias: [C_out].  Returns relu(conv1x1(x)) as [N, C_out, H, W]."""
    N, C_in, H, W = x_nchw.shape
    if weight.ndim == 4:
        weight = weight.reshape(weight.shape[0], weight.shape[1])
    C_out = weight.shape[0]
    assert weight.shape == (C_out, C_in)

    LANE = 128
    CHUNK = 32                                   # sublane rows per inner compute step
    itemsize = jnp.dtype(x_nchw.dtype).itemsize
    tile = {4: 8, 2: 16, 1: 32}.get(itemsize, 8)  # dtype-aware sublane tile

    HW = H * W
    R = -(-HW // LANE)                           # rows of 128 lanes
    HW_lane = R * LANE

    # Free reshape when HW is lane-aligned; pad only a genuinely ragged lane tail.
    x_flat = x_nchw.reshape(N, C_in, HW)
    if HW_lane != HW:
        # TODO(synk): a fully pad-free ragged-tail path would need an in-kernel masked
        # store; the copy is only paid when HW % 128 != 0.
        x_flat = jnp.pad(x_flat, ((0, 0), (0, 0), (0, HW_lane - HW)))
    x4 = x_flat.reshape(N, C_in, R, LANE)

    Bn, S8 = _choose_blocks(N, C_in, R, itemsize, tile)
    chunk = _pick_chunk(S8, CHUNK)
    grid = (N // Bn, pl.cdiv(R, S8))             # edge blocks (R % S8 != 0) are clipped

    w = weight.astype(jnp.float32)
    b = bias.astype(jnp.float32)

    out4 = pl.pallas_call(
        _make_kernel(chunk),
        out_shape=jax.ShapeDtypeStruct((N, C_out, R, LANE), x_nchw.dtype),
        grid=grid,
        in_specs=[
            pl.BlockSpec((Bn, C_in, S8, LANE), lambda n, s: (n, 0, s, 0)),
            pl.BlockSpec(memory_space=pltpu.MemorySpace.SMEM),   # weight (C_out, C_in)
            pl.BlockSpec(memory_space=pltpu.MemorySpace.SMEM),   # bias   (C_out,)
        ],
        out_specs=pl.BlockSpec((Bn, C_out, S8, LANE), lambda n, s: (n, 0, s, 0)),
        compiler_params=pltpu.CompilerParams(
            dimension_semantics=("parallel", "parallel")),
        cost_estimate=pl.CostEstimate(
            flops=2 * N * HW_lane * C_in * C_out,
            transcendentals=0,
            bytes_accessed=N * HW_lane * (C_in + C_out) * itemsize
                           + (w.size + b.size) * 4),
    )(x4, w, b)

    out = out4.reshape(N, C_out, HW_lane)
    if HW_lane != HW:
        out = out[:, :, :HW]
    return out.reshape(N, C_out, H, W)


if __name__ == "__main__":
    classes = 5                          # C_in = 3 + classes = 8
    N, H, W = 2, 16, 16
    C_in, C_out = 3 + classes, 3

    key = jax.random.PRNGKey(0)
    kx, kw, kb = jax.random.split(key, 3)

    x = jax.random.normal(kx, (N, C_in, H, W), dtype=jnp.float32)
    weight = jax.random.normal(kw, (C_out, C_in), dtype=jnp.float32) * 0.1
    bias = jax.random.normal(kb, (C_out,), dtype=jnp.float32) * 0.1

    def ref_forward(xx, ww, bb):
        y = jnp.einsum("nchw,oc->nohw", xx, ww) + bb[None, :, None, None]
        return jnp.maximum(y, 0.0)       # nn.ReLU(inplace=True) mutates the conv output

    out = jax.block_until_ready(four2three_forward(x, weight, bias))
    assert out.shape == (N, C_out, H, W)
    assert jnp.allclose(out, ref_forward(x, weight, bias), atol=1e-5, rtol=1e-5)

    # Extra coverage: ragged lane tail (17x17, N=1) and lane-aligned multi-chunk (64x64).
    for (n2, h2, w2) in [(1, 17, 17), (2, 64, 64)]:
        x2 = jax.random.normal(jax.random.PRNGKey(1), (n2, C_in, h2, w2),
                               dtype=jnp.float32)
        o2 = jax.block_until_ready(four2three_forward(x2, weight, bias))
        assert o2.shape == (n2, C_out, h2, w2)
        assert jnp.allclose(o2, ref_forward(x2, weight, bias), atol=1e-5, rtol=1e-5)

    print("KERNEL_OK")
</pallas_src>

<mosaic_0001>
module attributes {stable_mosaic.version = 11 : i64} {
  func.func @kernel(%arg0: i32, %arg1: i32, %arg2: memref<1x8x2x128xf32, #tpu.memory_space<vmem>>, %arg3: memref<3x8xf32, #tpu.memory_space<smem>>, %arg4: memref<3xf32, #tpu.memory_space<smem>>, %arg5: memref<1x3x2x128xf32, #tpu.memory_space<vmem>>) attributes {dimension_semantics = [#tpu.dimension_semantics<parallel>, #tpu.dimension_semantics<parallel>], iteration_bounds = array<i64: 2, 1>, scalar_prefetch = 0 : i64, scratch_operands = 0 : i64, tpu.core_type = #tpu.core_type<tc>, window_params = [{transform_indices = @transform_0, window_bounds = array<i64: 1, 8, 2, 128>}, {transform_indices = @transform_1, window_bounds = array<i64: 3, 8>}, {transform_indices = @transform_2, window_bounds = array<i64: 3>}, {transform_indices = @transform_3, window_bounds = array<i64: 1, 3, 2, 128>}]} {
    %c0 = arith.constant 0 : index
    %c0_0 = arith.constant 0 : index
    %0 = memref.load %arg3[%c0, %c0_0] : memref<3x8xf32, #tpu.memory_space<smem>>
    %c0_1 = arith.constant 0 : index
    %c1 = arith.constant 1 : index
    %1 = memref.load %arg3[%c0_1, %c1] : memref<3x8xf32, #tpu.memory_space<smem>>
    %c0_2 = arith.constant 0 : index
    %c2 = arith.constant 2 : index
    %2 = memref.load %arg3[%c0_2, %c2] : memref<3x8xf32, #tpu.memory_space<smem>>
    %c0_3 = arith.constant 0 : index
    %c3 = arith.constant 3 : index
    %3 = memref.load %arg3[%c0_3, %c3] : memref<3x8xf32, #tpu.memory_space<smem>>
    %c0_4 = arith.constant 0 : index
    %c4 = arith.constant 4 : index
    %4 = memref.load %arg3[%c0_4, %c4] : memref<3x8xf32, #tpu.memory_space<smem>>
    %c0_5 = arith.constant 0 : index
    %c5 = arith.constant 5 : index
    %5 = memref.load %arg3[%c0_5, %c5] : memref<3x8xf32, #tpu.memory_space<smem>>
    %c0_6 = arith.constant 0 : index
    %c6 = arith.constant 6 : index
    %6 = memref.load %arg3[%c0_6, %c6] : memref<3x8xf32, #tpu.memory_space<smem>>
    %c0_7 = arith.constant 0 : index
    %c7 = arith.constant 7 : index
    %7 = memref.load %arg3[%c0_7, %c7] : memref<3x8xf32, #tpu.memory_space<smem>>
    %c1_8 = arith.constant 1 : index
    %c0_9 = arith.constant 0 : index
    %8 = memref.load %arg3[%c1_8, %c0_9] : memref<3x8xf32, #tpu.memory_space<smem>>
    %c1_10 = arith.constant 1 : index
    %c1_11 = arith.constant 1 : index
    %9 = memref.load %arg3[%c1_10, %c1_11] : memref<3x8xf32, #tpu.memory_space<smem>>
    %c1_12 = arith.constant 1 : index
    %c2_13 = arith.constant 2 : index
    %10 = memref.load %arg3[%c1_12, %c2_13] : memref<3x8xf32, #tpu.memory_space<smem>>
    %c1_14 = arith.constant 1 : index
    %c3_15 = arith.constant 3 : index
    %11 = memref.load %arg3[%c1_14, %c3_15] : memref<3x8xf32, #tpu.memory_space<smem>>
    %c1_16 = arith.constant 1 : index
    %c4_17 = arith.constant 4 : index
    %12 = memref.load %arg3[%c1_16, %c4_17] : memref<3x8xf32, #tpu.memory_space<smem>>
    %c1_18 = arith.constant 1 : index
    %c5_19 = arith.constant 5 : index
    %13 = memref.load %arg3[%c1_18, %c5_19] : memref<3x8xf32, #tpu.memory_space<smem>>
    %c1_20 = arith.constant 1 : index
    %c6_21 = arith.constant 6 : index
    %14 = memref.load %arg3[%c1_20, %c6_21] : memref<3x8xf32, #tpu.memory_space<smem>>
    %c1_22 = arith.constant 1 : index
    %c7_23 = arith.constant 7 : index
    %15 = memref.load %arg3[%c1_22, %c7_23] : memref<3x8xf32, #tpu.memory_space<smem>>
    %c2_24 = arith.constant 2 : index
    %c0_25 = arith.constant 0 : index
    %16 = memref.load %arg3[%c2_24, %c0_25] : memref<3x8xf32, #tpu.memory_space<smem>>
    %c2_26 = arith.constant 2 : index
    %c1_27 = arith.constant 1 : index
    %17 = memref.load %arg3[%c2_26, %c1_27] : memref<3x8xf32, #tpu.memory_space<smem>>
    %c2_28 = arith.constant 2 : index
    %c2_29 = arith.constant 2 : index
    %18 = memref.load %arg3[%c2_28, %c2_29] : memref<3x8xf32, #tpu.memory_space<smem>>
    %c2_30 = arith.constant 2 : index
    %c3_31 = arith.constant 3 : index
    %19 = memref.load %arg3[%c2_30, %c3_31] : memref<3x8xf32, #tpu.memory_space<smem>>
    %c2_32 = arith.constant 2 : index
    %c4_33 = arith.constant 4 : index
    %20 = memref.load %arg3[%c2_32, %c4_33] : memref<3x8xf32, #tpu.memory_space<smem>>
    %c2_34 = arith.constant 2 : index
    %c5_35 = arith.constant 5 : index
    %21 = memref.load %arg3[%c2_34, %c5_35] : memref<3x8xf32, #tpu.memory_space<smem>>
    %c2_36 = arith.constant 2 : index
    %c6_37 = arith.constant 6 : index
    %22 = memref.load %arg3[%c2_36, %c6_37] : memref<3x8xf32, #tpu.memory_space<smem>>
    %c2_38 = arith.constant 2 : index
    %c7_39 = arith.constant 7 : index
    %23 = memref.load %arg3[%c2_38, %c7_39] : memref<3x8xf32, #tpu.memory_space<smem>>
    %c0_40 = arith.constant 0 : index
    %24 = memref.load %arg4[%c0_40] : memref<3xf32, #tpu.memory_space<smem>>
    %c1_41 = arith.constant 1 : index
    %25 = memref.load %arg4[%c1_41] : memref<3xf32, #tpu.memory_space<smem>>
    %c2_42 = arith.constant 2 : index
    %26 = memref.load %arg4[%c2_42] : memref<3xf32, #tpu.memory_space<smem>>
    %c0_i32 = arith.constant 0 : i32
    %c2_i32 = arith.constant 2 : i32
    %27 = arith.muli %c0_i32, %c2_i32 : i32
    %28 = tpu.assume_multiple %27, 2 : i32
    %c0_43 = arith.constant 0 : index
    %c0_44 = arith.constant 0 : index
    %29 = arith.index_cast %28 : i32 to index
    %c0_45 = arith.constant 0 : index
    %30 = vector.load %arg2[%c0_43, %c0_44, %29, %c0_45] : memref<1x8x2x128xf32, #tpu.memory_space<vmem>>, vector<1x1x2x128xf32>
    %31 = vector.shape_cast %30 : vector<1x1x2x128xf32> to vector<2x128xf32>
    %c0_46 = arith.constant 0 : index
    %c1_47 = arith.constant 1 : index
    %32 = arith.index_cast %28 : i32 to index
    %c0_48 = arith.constant 0 : index
    %33 = vector.load %arg2[%c0_46, %c1_47, %32, %c0_48] : memref<1x8x2x128xf32, #tpu.memory_space<vmem>>, vector<1x1x2x128xf32>
    %34 = vector.shape_cast %33 : vector<1x1x2x128xf32> to vector<2x128xf32>
    %c0_49 = arith.constant 0 : index
    %c2_50 = arith.constant 2 : index
    %35 = arith.index_cast %28 : i32 to index
    %c0_51 = arith.constant 0 : index
    %36 = vector.load %arg2[%c0_49, %c2_50, %35, %c0_51] : memref<1x8x2x128xf32, #tpu.memory_space<vmem>>, vector<1x1x2x128xf32>
    %37 = vector.shape_cast %36 : vector<1x1x2x128xf32> to vector<2x128xf32>
    %c0_52 = arith.constant 0 : index
    %c3_53 = arith.constant 3 : index
    %38 = arith.index_cast %28 : i32 to index
    %c0_54 = arith.constant 0 : index
    %39 = vector.load %arg2[%c0_52, %c3_53, %38, %c0_54] : memref<1x8x2x128xf32, #tpu.memory_space<vmem>>, vector<1x1x2x128xf32>
    %40 = vector.shape_cast %39 : vector<1x1x2x128xf32> to vector<2x128xf32>
    %c0_55 = arith.constant 0 : index
    %c4_56 = arith.constant 4 : index
    %41 = arith.index_cast %28 : i32 to index
    %c0_57 = arith.constant 0 : index
    %42 = vector.load %arg2[%c0_55, %c4_56, %41, %c0_57] : memref<1x8x2x128xf32, #tpu.memory_space<vmem>>, vector<1x1x2x128xf32>
    %43 = vector.shape_cast %42 : vector<1x1x2x128xf32> to vector<2x128xf32>
    %c0_58 = arith.constant 0 : index
    %c5_59 = arith.constant 5 : index
    %44 = arith.index_cast %28 : i32 to index
    %c0_60 = arith.constant 0 : index
    %45 = vector.load %arg2[%c0_58, %c5_59, %44, %c0_60] : memref<1x8x2x128xf32, #tpu.memory_space<vmem>>, vector<1x1x2x128xf32>
    %46 = vector.shape_cast %45 : vector<1x1x2x128xf32> to vector<2x128xf32>
    %c0_61 = arith.constant 0 : index
    %c6_62 = arith.constant 6 : index
    %47 = arith.index_cast %28 : i32 to index
    %c0_63 = arith.constant 0 : index
    %48 = vector.load %arg2[%c0_61, %c6_62, %47, %c0_63] : memref<1x8x2x128xf32, #tpu.memory_space<vmem>>, vector<1x1x2x128xf32>
    %49 = vector.shape_cast %48 : vector<1x1x2x128xf32> to vector<2x128xf32>
    %c0_64 = arith.constant 0 : index
    %c7_65 = arith.constant 7 : index
    %50 = arith.index_cast %28 : i32 to index
    %c0_66 = arith.constant 0 : index
    %51 = vector.load %arg2[%c0_64, %c7_65, %50, %c0_66] : memref<1x8x2x128xf32, #tpu.memory_space<vmem>>, vector<1x1x2x128xf32>
    %52 = vector.shape_cast %51 : vector<1x1x2x128xf32> to vector<2x128xf32>
    %53 = vector.broadcast %0 : f32 to vector<2x128xf32>
    %54 = arith.mulf %31, %53 : vector<2x128xf32>
    %55 = vector.broadcast %24 : f32 to vector<2x128xf32>
    %56 = arith.addf %54, %55 : vector<2x128xf32>
    %57 = vector.broadcast %1 : f32 to vector<2x128xf32>
    %58 = arith.mulf %34, %57 : vector<2x128xf32>
    %59 = arith.addf %56, %58 : vector<2x128xf32>
    %60 = vector.broadcast %2 : f32 to vector<2x128xf32>
    %61 = arith.mulf %37, %60 : vector<2x128xf32>
    %62 = arith.addf %59, %61 : vector<2x128xf32>
    %63 = vector.broadcast %3 : f32 to vector<2x128xf32>
    %64 = arith.mulf %40, %63 : vector<2x128xf32>
    %65 = arith.addf %62, %64 : vector<2x128xf32>
    %66 = vector.broadcast %4 : f32 to vector<2x128xf32>
    %67 = arith.mulf %43, %66 : vector<2x128xf32>
    %68 = arith.addf %65, %67 : vector<2x128xf32>
    %69 = vector.broadcast %5 : f32 to vector<2x128xf32>
    %70 = arith.mulf %46, %69 : vector<2x128xf32>
    %71 = arith.addf %68, %70 : vector<2x128xf32>
    %72 = vector.broadcast %6 : f32 to vector<2x128xf32>
    %73 = arith.mulf %49, %72 : vector<2x128xf32>
    %74 = arith.addf %71, %73 : vector<2x128xf32>
    %75 = vector.broadcast %7 : f32 to vector<2x128xf32>
    %76 = arith.mulf %52, %75 : vector<2x128xf32>
    %77 = arith.addf %74, %76 : vector<2x128xf32>
    %cst = arith.constant 0.000000e+00 : f32
    %78 = vector.broadcast %cst : f32 to vector<2x128xf32>
    %79 = arith.maximumf %77, %78 : vector<2x128xf32>
    %c0_67 = arith.constant 0 : index
    %c0_68 = arith.constant 0 : index
    %80 = arith.index_cast %28 : i32 to index
    %c0_69 = arith.constant 0 : index
    %81 = vector.load %arg5[%c0_67, %c0_68, %80, %c0_69] : memref<1x3x2x128xf32, #tpu.memory_space<vmem>>, vector<1x1x2x128xf32>
    %82 = vector.shape_cast %81 : vector<1x1x2x128xf32> to vector<2x128xf32>
    %83 = vector.shape_cast %79 : vector<2x128xf32> to vector<1x1x2x128xf32>
    tpu.vector_store %arg5[%c0_67, %c0_68, %80, %c0_69], %83 {strides = array<i32>} : memref<1x3x2x128xf32, #tpu.memory_space<vmem>>, vector<1x1x2x128xf32>,
    %84 = vector.broadcast %8 : f32 to vector<2x128xf32>
    %85 = arith.mulf %31, %84 : vector<2x128xf32>
    %86 = vector.broadcast %25 : f32 to vector<2x128xf32>
    %87 = arith.addf %85, %86 : vector<2x128xf32>
    %88 = vector.broadcast %9 : f32 to vector<2x128xf32>
    %89 = arith.mulf %34, %88 : vector<2x128xf32>
    %90 = arith.addf %87, %89 : vector<2x128xf32>
    %91 = vector.broadcast %10 : f32 to vector<2x128xf32>
    %92 = arith.mulf %37, %91 : vector<2x128xf32>
    %93 = arith.addf %90, %92 : vector<2x128xf32>
    %94 = vector.broadcast %11 : f32 to vector<2x128xf32>
    %95 = arith.mulf %40, %94 : vector<2x128xf32>
    %96 = arith.addf %93, %95 : vector<2x128xf32>
    %97 = vector.broadcast %12 : f32 to vector<2x128xf32>
    %98 = arith.mulf %43, %97 : vector<2x128xf32>
    %99 = arith.addf %96, %98 : vector<2x128xf32>
    %100 = vector.broadcast %13 : f32 to vector<2x128xf32>
    %101 = arith.mulf %46, %100 : vector<2x128xf32>
    %102 = arith.addf %99, %101 : vector<2x128xf32>
    %103 = vector.broadcast %14 : f32 to vector<2x128xf32>
    %104 = arith.mulf %49, %103 : vector<2x128xf32>
    %105 = arith.addf %102, %104 : vector<2x128xf32>
    %106 = vector.broadcast %15 : f32 to vector<2x128xf32>
    %107 = arith.mulf %52, %106 : vector<2x128xf32>
    %108 = arith.addf %105, %107 : vector<2x128xf32>
    %cst_70 = arith.constant 0.000000e+00 : f32
    %109 = vector.broadcast %cst_70 : f32 to vector<2x128xf32>
    %110 = arith.maximumf %108, %109 : vector<2x128xf32>
    %c0_71 = arith.constant 0 : index
    %c1_72 = arith.constant 1 : index
    %111 = arith.index_cast %28 : i32 to index
    %c0_73 = arith.constant 0 : index
    %112 = vector.load %arg5[%c0_71, %c1_72, %111, %c0_73] : memref<1x3x2x128xf32, #tpu.memory_space<vmem>>, vector<1x1x2x128xf32>
    %113 = vector.shape_cast %112 : vector<1x1x2x128xf32> to vector<2x128xf32>
    %114 = vector.shape_cast %110 : vector<2x128xf32> to vector<1x1x2x128xf32>
    tpu.vector_store %arg5[%c0_71, %c1_72, %111, %c0_73], %114 {strides = array<i32>} : memref<1x3x2x128xf32, #tpu.memory_space<vmem>>, vector<1x1x2x128xf32>,
    %115 = vector.broadcast %16 : f32 to vector<2x128xf32>
    %116 = arith.mulf %31, %115 : vector<2x128xf32>
    %117 = vector.broadcast %26 : f32 to vector<2x128xf32>
    %118 = arith.addf %116, %117 : vector<2x128xf32>
    %119 = vector.broadcast %17 : f32 to vector<2x128xf32>
    %120 = arith.mulf %34, %119 : vector<2x128xf32>
    %121 = arith.addf %118, %120 : vector<2x128xf32>
    %122 = vector.broadcast %18 : f32 to vector<2x128xf32>
    %123 = arith.mulf %37, %122 : vector<2x128xf32>
    %124 = arith.addf %121, %123 : vector<2x128xf32>
    %125 = vector.broadcast %19 : f32 to vector<2x128xf32>
    %126 = arith.mulf %40, %125 : vector<2x128xf32>
    %127 = arith.addf %124, %126 : vector<2x128xf32>
    %128 = vector.broadcast %20 : f32 to vector<2x128xf32>
    %129 = arith.mulf %43, %128 : vector<2x128xf32>
    %130 = arith.addf %127, %129 : vector<2x128xf32>
    %131 = vector.broadcast %21 : f32 to vector<2x128xf32>
    %132 = arith.mulf %46, %131 : vector<2x128xf32>
    %133 = arith.addf %130, %132 : vector<2x128xf32>
    %134 = vector.broadcast %22 : f32 to vector<2x128xf32>
    %135 = arith.mulf %49, %134 : vector<2x128xf32>
    %136 = arith.addf %133, %135 : vector<2x128xf32>
    %137 = vector.broadcast %23 : f32 to vector<2x128xf32>
    %138 = arith.mulf %52, %137 : vector<2x128xf32>
    %139 = arith.addf %136, %138 : vector<2x128xf32>
    %cst_74 = arith.constant 0.000000e+00 : f32
    %140 = vector.broadcast %cst_74 : f32 to vector<2x128xf32>
    %141 = arith.maximumf %139, %140 : vector<2x128xf32>
    %c0_75 = arith.constant 0 : index
    %c2_76 = arith.constant 2 : index
    %142 = arith.index_cast %28 : i32 to index
    %c0_77 = arith.constant 0 : index
    %143 = vector.load %arg5[%c0_75, %c2_76, %142, %c0_77] : memref<1x3x2x128xf32, #tpu.memory_space<vmem>>, vector<1x1x2x128xf32>
    %144 = vector.shape_cast %143 : vector<1x1x2x128xf32> to vector<2x128xf32>
    %145 = vector.shape_cast %141 : vector<2x128xf32> to vector<1x1x2x128xf32>
    tpu.vector_store %arg5[%c0_75, %c2_76, %142, %c0_77], %145 {strides = array<i32>} : memref<1x3x2x128xf32, #tpu.memory_space<vmem>>, vector<1x1x2x128xf32>,
    %c1_i32 = arith.constant 1 : i32
    return
  }
  func.func @transform_0(%arg0: i32, %arg1: i32) -> (i32, i32, i32, i32) {
    %c0_i32 = arith.constant 0 : i32
    %c0_i32_0 = arith.constant 0 : i32
    %c0_i32_1 = arith.constant 0 : i32
    return %arg0, %c0_i32, %arg1, %c0_i32_0 : i32, i32, i32, i32
  }
  func.func @transform_1(%arg0: i32, %arg1: i32) -> (i32, i32) {
    %c0_i32 = arith.constant 0 : i32
    %c0_i32_0 = arith.constant 0 : i32
    %c0_i32_1 = arith.constant 0 : i32
    return %c0_i32, %c0_i32_0 : i32, i32
  }
  func.func @transform_2(%arg0: i32, %arg1: i32) -> i32 {
    %c0_i32 = arith.constant 0 : i32
    %c0_i32_0 = arith.constant 0 : i32
    return %c0_i32 : i32
  }
  func.func @transform_3(%arg0: i32, %arg1: i32) -> (i32, i32, i32, i32) {
    %c0_i32 = arith.constant 0 : i32
    %c0_i32_0 = arith.constant 0 : i32
    %c0_i32_1 = arith.constant 0 : i32
    return %arg0, %c0_i32, %arg1, %c0_i32_0 : i32, i32, i32, i32
  }
}

</mosaic_0001>

<bundles_post_ra>
// kernel: tpu_custom_call.1
= control target key start
LH: loop header
LB: loop body
LE: loop exit
PB: predicated region body
PF: predicated region fallthrough
CT: control target
= control target key end

     0   :  { %s1092_s0 = inlined_call_operand.hbm [shape: f32[2,8,2,128], index: 0, kind: input, shape index: {}]   ;;  %s1093_s1 = inlined_call_operand.hbm [shape: f32[3,8], index: 1, kind: input, shape index: {}]   ;;  %s1094_s2 = inlined_call_operand.vmem [shape: f32[3], index: 2, kind: input, shape index: {}]   ;;  %s1095_s3 = inlined_call_operand.hbm [shape: f32[2,3,2,128], index: 3, kind: output, shape index: {}]  }
   0x1   :  { %1096 = sst [smem:[#allocation14_spill]] %s1093_s1 }
   0x2   :  { %8 = vsyncpa [#allocation3], 0 }
   0x3   :  { %10 = vsyncpa [#allocation3 + $0x1], 0 }
   0x4   :  { %11 = vsyncpa [#allocation5], 0 }
   0x5   :  { %12 = vsyncpa [#allocation6], 0 }
   0x6   :  { %13 = vsyncpa [#allocation4], 0 }
   0x7   :  { %15 = vsyncpa [#allocation4 + $0x1], 0  ;;  %s820_s12 = smov 0   ;;  %s822_s13 = smov 0  }
   0x8   :  { %s824_s14 = smov 0   ;;  %s826_s15 = smov 0  }
   0x9   :  { %s828_s16 = smov 0   ;;  %s830_s17 = smov 0  }
   0xa LB: > { %s502_s18 = sadd.s32 4294967295, %s792_s17   ;;  %s503_s19 = sadd.s32 4294967294, %s792_s17   ;;  %s792_s17 = sphi %s830_s17, %s21_s17   ;;  %s788_s16 = sphi %s828_s16, %s1109_s16   ;;  %s784_s15 = sphi %s826_s15, %s1108_s15   ;;  %s780_s14 = sphi %s824_s14, %s1107_s14   ;;  %s776_s13 = sphi %s822_s13, %s1106_s13   ;;  %s772_s12 = sphi %s820_s12, %s1105_s12  }
   0xb   : > { %s42_s20 = sadd.s32 1, %s780_s14  ;;  %p49_p0 = scmp.ne.s32.totalorder %s780_s14, %s776_s13 }
   0xc   : > { %p50_p1 = scmp.eq.s32.totalorder %s792_s17, 0  ;;  %p55_p2 = scmp.ne.s32.totalorder %s776_s13, %s772_s12 }
   0xd   : > { %p858_p3 = scmp.eq.s32.totalorder %s502_s18, 0  ;;  %p123_p4 = scmp.eq.s32.totalorder %s502_s18, 1 }
   0xe   : > { %p862_p5 = por %p50_p1, %p49_p0  ;;  %p129_p6 = scmp.eq.s32.totalorder %s503_s19, 1 }
   0xf   : > { %p868_p7 = por %p858_p3, %p55_p2  ;;  %p872_p8 = por %p123_p4, %p49_p0 }
  0x10   : > { %p876_p9 = por %p129_p6, %p55_p2  ;;  %p504_p10 = scmp.ge.s32.totalorder %s792_s17, 1 }
  0x11   : > { %p136_p11 = scmp.lt.s32.totalorder %s792_s17, 3  ;;  %s1102_s1 = sld [smem:[#allocation14_spill]] }
  0x12   : > { %p507_p13 = scmp.ge.s32.totalorder %s792_s17, 2  ;;  %p584_p0 = scmp.lt.s32.totalorder %s792_s17, 2 }
  0x13   : > { %p885_p12 = pnand %p504_p10, %p136_p11  ;;  %s158_s5 = sshll.u32 %s1094_s2, 4  ;;  %s159_s5 = int_to_ptr.vmem [resolvable:$true] %s158_s5 }
  0x14   : > { %p898_p2 = pnand %p584_p0, %p862_p5  ;;  %s794_s7 = smov [#allocation7]  }
  0x15   : > { %p567_p1 = pneg %p885_p12  ;;  %s795_s8 = smov [#allocation8]  }
  0x16   : > { %s33_s9 = sadd.s32 1, %s788_s16  ;;  %s169_s10 = sand.u32 1, %s780_s14  }
  0x17   : > { %s148_s28 = sshll.u32 %s1102_s1, 4  ;;  %p568_p4 = pnand %p567_p1, %p858_p3  ;;  %s149_s28 = int_to_ptr.hbm [resolvable:$true] %s148_s28 }
  0x18   : > { %p35_p6 = scmp.ge.s32.totalorder %s33_s9, 2  ;;  %s508_s11 = sshll.u32 %s169_s10, 4 }
  0x19   : > { %570 = dma.hbm_to_smem (!%p568_p4), %s149_s28, 64, %s794_s7, [#allocation5]  }
  0x1a   : > { %573 = dma.vmem_to_smem (!%p568_p4), %s159_s5, 16, %s795_s8, [#allocation6]  }
  0x1b   : > { %s552_s18 = sshll.u32 %s788_s16, 4  ;;  %s1111_s9 = smov (%p35_p6, %s33_s9), 0 }
  0x1c   : > { %s179_s26 = scalar_lea.hbm %s1092_s0, %s552_s18  ;;  %s37_s27 = ssub.s32 %s788_s16, %s1111_s9 }
  0x1d   : > { %s180_s30 = sshll.u32 %s179_s26, 4  ;;  %p40_p5 = scmp.eq.s32.totalorder %s37_s27, 0  ;;  %s181_s30 = int_to_ptr.hbm [resolvable:$true] %s180_s30 }
  0x1e   : > { %s173_s28 = scalar_lea.vmem [#allocation2], %s508_s11  ;;  %s170_s7 = scalar_lea.sflag [#allocation3], %s169_s10 }
  0x1f   : > { %s182_s4 = sshll.u32 %s173_s28, 4  ;;  %s796_s8 = smov 32   ;;  %s183_s4 = int_to_ptr.vmem [resolvable:$true] %s182_s4 }
  0x20   : > { %s917_s5 = scalar_select %p40_p5, %s780_s14, %s42_s20  }
  0x21   : > { %s797_s1 = smov 2   ;;  %194 = sbr.rel (%p885_p12) target bundleno = 97 (0x61), region = 32 }
  0x22   : > { %577 = dma.hbm_to_vmem [thread:$0]  (!%p898_p2), %s181_s30, 256, %s183_s4, %s170_s7, %s796_s8, %s796_s8, %s797_s1  }
  0x23   : > { %s924_s18 = sand.u32 (!%p885_p12), 1, %s776_s13  }
  0x24   : > { %s512_s11 = sshll.u32 (!%p885_p12), %s924_s18, 4  ;;  %s197_s19 = scalar_lea.sflag (!%p885_p12), [#allocation3], %s924_s18 }
  0x25   : > { %s928_s22 = scalar_lea.vmem (!%p885_p12), [#allocation2], %s512_s11 }
  0x26   : > { %755 = dma.done.wait (%p868_p7), %s197_s19, 256  }
  0x27   : > { %757 = vsyncadd (%p868_p7), %s197_s19, 4294967040 }
  0x28   : > { %759 = dma.done.wait (%p858_p3), [#allocation5], 64  }
  0x29   : > { %761 = vsyncadd (%p858_p3), [#allocation5], 4294967232 }
  0x2a   : > { %763 = dma.done.wait (%p858_p3), [#allocation6], 16  }
  0x2b   : > { %765 = vsyncadd (%p858_p3), [#allocation6], 4294967280 }
  0x2c   : > { %216 = sfence }
  0x2d   : > { %s235_s1 = sld [smem:[#allocation7]]  ;;  %v945_v0 = vld [vmem:[%s928_s22] sm:$0x3]  ;;  %v952_v2 = vld [vmem:[%s928_s22 + $0x2] sm:$0x3] }
  0x2e   : > { %s515_s20 = sld [smem:[#allocation7 + $0x1]]  ;;  %v960_v5 = vld [vmem:[%s928_s22 + $0x4] sm:$0x3]  ;;  %v968_v8 = vld [vmem:[%s928_s22 + $0x6] sm:$0x3] }
  0x2f   : > { %s516_s23 = sld [smem:[#allocation7 + $0x2]]  ;;  %v974_v13 = vld [vmem:[%s928_s22 + $0x8] sm:$0x3]  ;;  %v982_v18 = vld [vmem:[%s928_s22 + $0xa] sm:$0x3] }
  0x30   : > { %s517_s29 = sld [smem:[#allocation7 + $0x3]]  ;;  %v992_v23 = vld [vmem:[%s928_s22 + $0xc] sm:$0x3]  ;;  %v1003_v29 = vld [vmem:[%s928_s22 + $0xe] sm:$0x3] }
  0x31   : > { %s942_s6 = sld [smem:[#allocation7 + $0x4]] }
  0x32   : > { %s259_s10 = sld [smem:[#allocation8]] }
  0x33   : > { %v284_v1 = vstv %s235_s1  ;;  %s947_s26 = sld [smem:[#allocation7 + $0x80]] }
  0x34   : > { %s949_s27 = sld [smem:[#allocation7 + $0x5]]  ;;  %v288_v3 = vstv %s515_s20  ;;  %v285_v4 = vmul.f32 %v284_v1, %v945_v0 }
  0x35   : > { %s955_s21 = sld [smem:[#allocation7 + $0x81]]  ;;  %v291_v6 = vstv %s516_s23  ;;  %v289_v7 = vmul.f32 %v952_v2, %v288_v3 }
  0x36   : > { %s957_s30 = sld [smem:[#allocation7 + $0x6]]  ;;  %v294_v10 = vstv %s517_s29  ;;  %v292_v12 = vmul.f32 %v960_v5, %v291_v6 }
  0x37   : > { %s963_s28 = sld [smem:[#allocation7 + $0x82]]  ;;  %v297_v14 = vstv %s942_s6  ;;  %v295_v16 = vmul.f32 %v968_v8, %v294_v10 }
  0x38   : > { %s965_s4 = sld [smem:[#allocation7 + $0x7]]  ;;  %v286_v9 = vstv %s259_s10  ;;  %v298_v21 = vmul.f32 %v974_v13, %v297_v14 }
  0x39   : > { %v287_v11 = vadd.f32 %v286_v9, %v285_v4  ;;  %s971_s7 = sld [smem:[#allocation7 + $0x83]]  ;;  %v311_v17 = vstv %s947_s26  ;;  %s553_s26 = smul.u32 6, %s924_s18 }
  0x3a   : > { %s977_s8 = sld [smem:[#allocation7 + $0x84]]  ;;  %v300_v19 = vstv %s949_s27  ;;  %v312_v25 = vmul.f32 %v311_v17, %v945_v0 }
  0x3b   : > { %v290_v15 = vadd.f32 %v289_v7, %v287_v11  ;;  %s538_s11 = sld [smem:[#allocation8 + $0x1]]  ;;  %v315_v22 = vstv %s955_s21  ;;  %v301_v27 = vmul.f32 %v982_v18, %v300_v19 }
  0x3c   : > { %s985_s19 = sld [smem:[#allocation7 + $0x100]]  ;;  %v303_v24 = vstv %s957_s30  ;;  %v316_v31 = vmul.f32 %v952_v2, %v315_v22 }
  0x3d   : > { %v293_v20 = vadd.f32 %v292_v12, %v290_v15  ;;  %s988_s1 = sld [smem:[#allocation7 + $0x85]]  ;;  %v318_v28 = vstv %s963_s28  ;;  %v304_v33 = vmul.f32 %v992_v23, %v303_v24 }
  0x3e   : > { %s996_s20 = sld [smem:[#allocation7 + $0x101]]  ;;  %v306_v30 = vstv %s965_s4  ;;  %v319_v37 = vmul.f32 %v960_v5, %v318_v28  ;;  %s1038_s4 = scalar_lea.vmem [#allocation9], %s553_s26 }
  0x3f   : > { %v296_v26 = vadd.f32 %v295_v16, %v293_v20  ;;  %s999_s23 = sld [smem:[#allocation7 + $0x86]]  ;;  %v321_v35 = vstv %s971_s7  ;;  %v307_v39 = vmul.f32 %v1003_v29, %v306_v30  ;;  %s554_s7 = smul.u32 6, %s784_s15 }
  0x40   : > { %s1007_s29 = sld [smem:[#allocation7 + $0x102]]  ;;  %v324_v40 = vstv %s977_s8  ;;  %v322_v42 = vmul.f32 %v968_v8, %v321_v35  ;;  %s368_s15 = scalar_lea.sflag [#allocation4], %s924_s18 }
  0x41   : > { %v299_v32 = vadd.f32 %v298_v21, %v296_v26  ;;  %s1010_s6 = sld [smem:[#allocation7 + $0x87]]  ;;  %v313_v34 = vstv %s538_s11  ;;  %v325_v47 = vmul.f32 %v974_v13, %v324_v40 }
  0x42   : > { %v314_v36 = vadd.f32 %v313_v34, %v312_v25  ;;  %s1014_s22 = sld [smem:[#allocation7 + $0x103]]  ;;  %v339_v43 = vstv %s985_s19  ;;  %s380_s19 = scalar_lea.hbm %s1095_s3, %s554_s7 }
  0x43   : > { %v302_v38 = vadd.f32 %v301_v27, %v299_v32  ;;  %s1018_s10 = sld [smem:[#allocation7 + $0x104]]  ;;  %v327_v45 = vstv %s988_s1  ;;  %v340_v51 = vmul.f32 %v339_v43, %v945_v0  ;;  %s381_s1 = sshll.u32 %s1038_s4, 4  ;;  %s382_s1 = int_to_ptr.vmem [resolvable:$true] %s381_s1 }
  0x44   : > { %v317_v41 = vadd.f32 %v316_v31, %v314_v36  ;;  %s539_s27 = sld [smem:[#allocation8 + $0x2]]  ;;  %v343_v48 = vstv %s996_s20  ;;  %v328_v53 = vmul.f32 %v982_v18, %v327_v45  ;;  %s383_s20 = sshll.u32 %s380_s19, 4  ;;  %s384_s20 = int_to_ptr.hbm [resolvable:$true] %s383_s20 }
  0x45   : > { %v305_v44 = vadd.f32 %v304_v33, %v302_v38  ;;  %s1025_s21 = sld [smem:[#allocation7 + $0x105]]  ;;  %v330_v50 = vstv %s999_s23  ;;  %v344_v57 = vmul.f32 %v952_v2, %v343_v48  ;;  %s716_s23 = sshra.s32 %s384_s20, 4  ;;  %s717_s23 = int_to_ptr.hbm [resolvable:$true] %s716_s23 }
  0x46   : > { %v320_v46 = vadd.f32 %v319_v37, %v317_v41  ;;  %s1031_s30 = sld [smem:[#allocation7 + $0x106]]  ;;  %v346_v54 = vstv %s1007_s29  ;;  %v331_v59 = vmul.f32 %v992_v23, %v330_v50  ;;  %s718_s29 = scalar_lea.hbm %s717_s23, 6 }
  0x47   : > { %v308_v49 = vadd.f32 %v307_v39, %v305_v44  ;;  %v333_v56 = vstv %s1010_s6  ;;  %s537_s28 = sld [smem:[#allocation7 + $0x107]]  ;;  %v347_v63 = vmul.f32 %v960_v5, %v346_v54  ;;  %p719_p3 = scmp.ne.s32.totalorder %s717_s23, %s718_s29 }
  0x48   : > { %v323_v52 = vadd.f32 %v322_v42, %v320_v46  ;;  %v349_v61 = vstv %s1014_s22  ;;  %v334_v1 = vmul.f32 %v1003_v29, %v333_v56  ;;  %p723_p11 = scmp.lt.s32.totalorder %s717_s23, %s1095_s3 }
  0x49   : > { %v309_v55 = vmax.f32 %v308_v49, 0.0  ;;  %v352_v2 = vstv %s1018_s10  ;;  %v350_v4 = vmul.f32 %v968_v8, %v349_v61  ;;  %p720_p7 = pnand %p719_p3, %p872_p8  ;;  %s722_s10 = scalar_lea.hbm %s1095_s3, 12 }
  0x4a   : > { %v326_v58 = vadd.f32 %v325_v47, %v323_v52  ;;  %v341_v60 = vstv %s539_s27  ;;  %v353_v10 = vmul.f32 %v974_v13, %v352_v2  ;;  %p724_p12 = scmp.lt.s32.totalorder %s722_s10, %s718_s29 }
  0x4b   : > { %310 = vst [vmem:[%s1038_s4] sm:$0x3] %v309_v55  ;;  %v342_v62 = vadd.f32 %v341_v60, %v340_v51  ;;  %v355_v7 = vstv %s1025_s21  ;;  %p721_p10 = pneg %p720_p7 }
  0x4c   : > { %v329_v0 = vadd.f32 %v328_v53, %v326_v58  ;;  %v358_v12 = vstv %s1031_s30  ;;  %v356_v15 = vmul.f32 %v982_v18, %v355_v7  ;;  %p725_p0 = por %p724_p12, %p723_p11 }
  0x4d   : > { %v345_v3 = vadd.f32 %v344_v57, %v342_v62  ;;  %v361_v16 = vstv %s537_s28  ;;  %v359_v19 = vmul.f32 %v992_v23, %v358_v12 }
  0x4e   : > { %v332_v6 = vadd.f32 %v331_v59, %v329_v0  ;;  %v362_v20 = vmul.f32 %v1003_v29, %v361_v16  ;;  %p726_p1 = pnand %p725_p0, %p721_p10 }
  0x4f   : > { %v348_v9 = vadd.f32 %v347_v63, %v345_v3 }
  0x50   : > { %v335_v11 = vadd.f32 %v334_v1, %v332_v6 }
  0x51   : > { %v351_v14 = vadd.f32 %v350_v4, %v348_v9 }
  0x52   : > { %v336_v5 = vmax.f32 %v335_v11, 0.0 }
  0x53   : > { %v354_v17 = vadd.f32 %v353_v10, %v351_v14 }
  0x54   : > { %547 = vst [vmem:[%s1038_s4 + $0x2] sm:$0x3] %v336_v5 }
  0x55   : > { %v357_v8 = vadd.f32 %v356_v15, %v354_v17 }
  0x57   : > { %v360_v13 = vadd.f32 %v359_v19, %v357_v8 }
  0x59   : > { %v363_v18 = vadd.f32 %v362_v20, %v360_v13 }
  0x5b   : > { %v364_v21 = vmax.f32 %v363_v18, 0.0 }
  0x5d   : > { %548 = vst [vmem:[%s1038_s4 + $0x4] sm:$0x3] %v364_v21 }
  0x5e   : > { %729 = shalt.err (!%p726_p1)
}
  0x5f   : > { %s798_s18 = smov 32   ;;  %s799_s21 = smov 2  }
  0x60   : > { %565 = dma.vmem_to_hbm [thread:$0]  (%p872_p8), %s382_s1, 96, %s384_s20, %s368_s15, %s798_s18, %s798_s18, %s799_s21  }
  0x61 PF: > { %s398_s30 = sand.u32 1, %s772_s12   ;;  %p579_p2 = pnand %p507_p13, %p876_p9 }
  0x62   : > { %s399_s28 = scalar_lea.sflag [#allocation4], %s398_s30 }
  0x63   : > { %p580_p4 = pneg %p579_p2 }
  0x65   : > { %767 = dma.done.wait (%p580_p4), %s399_s28, 96  }
  0x66   : > { %769 = vsyncadd (%p580_p4), %s399_s28, 4294967200  ;;  %s21_s17 = sadd.s32 1, %s792_s17   ;;  %s1105_s12 = smov %s776_s13 }
  0x67   : > { %p18_p6 = scmp.ge.s32.totalorder %s21_s17, 4   ;;  %s1106_s13 = smov %s780_s14 }
  0x68   : > { %s1107_s14 = smov %s917_s5  ;;  %s1108_s15 = smov %s788_s16 }
  0x69   : > { %s1109_s16 = smov %s1111_s9  ;;  %20 = sbr.rel (!%p18_p6) target bundleno = 10 (0xa), region = 96 }
  0x6e   :  { %405 = vsyncpa [#allocation3], 1 }
  0x6f   :  { %407 = vsyncpa [#allocation3 + $0x1], 1 }
  0x70   :  { %408 = vsyncpa [#allocation4], 1 }
  0x71   :  { %410 = vsyncpa [#allocation4 + $0x1], 1 }
  0x72   :  { %411 = vsyncpa [#allocation5], 1 }
  0x73   :  { %413 = vsyncpa [#allocation5 + $0x1], 1 }
  0x74   :  { %414 = vsyncpa [#allocation6], 1 }
  0x75   :  { %416 = vsyncpa [#allocation6 + $0x1], 1 }

</bundles_post_ra>
